<compile_context>
chip_gen: v7x
topology: tpu7x:2x2x1
jax: 0.10.0
libtpu: 0.0.40
codegen_flags: <defaults>
</compile_context>

<pallas_src>
import jax
import jax.numpy as jnp
from jax.experimental import pallas as pl
from jax.experimental.pallas import tpu as pltpu

# ---------------- config (small synthetic sizes) ----------------
C_IN = 4                             # feature channels per view
P_RES = 4                            # pooler resolution (P x P)
SPATIAL_SCALE = 0.25
D_IN = 2 * C_IN * P_RES * P_RES      # stereo concat, flattened = 128
H_REP = 32                           # representation size of FC6/FC7
H_PAD = 128                          # lane-padded hidden width
N_CLS = 5                            # number of classes
BOX_D = 4 * N_CLS                    # class-specific box regression dim = 20
OUT_W = 128                          # lane-dense fused output slab [feat|cls|box|pad]

assert H_REP + N_CLS + BOX_D <= OUT_W
assert D_IN == 128


def _round_up(v, m):
    return ((v + m - 1) // m) * m


def _choose_tile_r(R):
    """Adaptive row tile: no padding waste for tiny R, big tiles + >=2 grid
    steps (v7x megacore) for large R."""
    r16 = _round_up(max(R, 16), 16)          # bf16 sublane tile
    if r16 <= 256:
        tile = r16                            # single full-array tile
    elif r16 <= 512:
        tile = 256
    else:
        tile = min(1024, _round_up((r16 + 1) // 2, 256))
    r_pad = _round_up(r16, tile)
    return tile, r_pad


# ---------------- Pallas kernel: fused FC6/FC7 + predictor ----------------
def _stereo_head_kernel(x_ref, w6_ref, b6_ref, w7_ref, b7_ref,
                        wp_ref, bp_ref, out_ref):
    # FC6 + ReLU  (bf16 MXU operands, f32 accumulate / elementwise)
    h = jnp.dot(x_ref[...], w6_ref[...],
                preferred_element_type=jnp.float32) + b6_ref[...]
    h = jnp.maximum(h, 0.0)
    # FC7 + ReLU
    h = jnp.dot(h.astype(jnp.bfloat16), w7_ref[...],
                preferred_element_type=jnp.float32) + b7_ref[...]
    h = jnp.maximum(h, 0.0)
    # Fused predictor: wp = [I | Wcls | Wbox | 0] so a single bf16 MXU pass
    # emits feat (identity pass-through), class logits and box deltas into one
    # lane-dense 128-wide slab -> one unmasked full-tile bf16 store.
    out = jnp.dot(h.astype(jnp.bfloat16), wp_ref[...],
                  preferred_element_type=jnp.float32) + bp_ref[...]
    out_ref[...] = out.astype(jnp.bfloat16)


def stereo_box_head_mlp(pooled_flat, params):
    """pooled_flat: (R, D_IN) bfloat16.  Returns (x, class_logits, box_regression)."""
    R, D = pooled_flat.shape
    assert D == D_IN
    w6, b6, w7, b7, wc, bc, wb, bb = params

    # --- lane-pad FC6/FC7 weights to 128 hidden lanes (zero columns/rows) ---
    w6p = jnp.zeros((D_IN, H_PAD), jnp.float32).at[:, :H_REP].set(w6)
    b6p = jnp.zeros((1, H_PAD), jnp.float32).at[:, :H_REP].set(b6)
    w7p = jnp.zeros((H_PAD, H_PAD), jnp.float32).at[:H_REP, :H_REP].set(w7)
    b7p = jnp.zeros((1, H_PAD), jnp.float32).at[:, :H_REP].set(b7)

    # --- pack predictor weights: [I | Wcls | Wbox | 0] on the first H_REP rows
    wp = jnp.zeros((H_PAD, OUT_W), jnp.float32)
    wp = wp.at[:H_REP, :H_REP].set(jnp.eye(H_REP, dtype=jnp.float32))
    wp = wp.at[:H_REP, H_REP:H_REP + N_CLS].set(wc)
    wp = wp.at[:H_REP, H_REP + N_CLS:H_REP + N_CLS + BOX_D].set(wb)
    bp = jnp.zeros((1, OUT_W), jnp.float32)
    bp = bp.at[:, H_REP:H_REP + N_CLS].set(bc)
    bp = bp.at[:, H_REP + N_CLS:H_REP + N_CLS + BOX_D].set(bb)

    # --- adaptive row tiling + pad (input already bf16) ---
    tile_r, r_pad = _choose_tile_r(R)
    x = pooled_flat
    if r_pad != R:
        x = jnp.pad(x, ((0, r_pad - R), (0, 0)))

    def resident(shape):
        # constant index_map -> block DMA'd once and kept resident in VMEM
        return pl.BlockSpec(shape, lambda i: (0, 0))

    out = pl.pallas_call(
        _stereo_head_kernel,
        grid=(r_pad // tile_r,),
        in_specs=[
            pl.BlockSpec((tile_r, D_IN), lambda i: (i, 0)),     # activations
            resident((D_IN, H_PAD)), resident((1, H_PAD)),      # FC6
            resident((H_PAD, H_PAD)), resident((1, H_PAD)),     # FC7
            resident((H_PAD, OUT_W)), resident((1, OUT_W)),     # fused predictor
        ],
        out_specs=pl.BlockSpec((tile_r, OUT_W), lambda i: (i, 0)),
        out_shape=jax.ShapeDtypeStruct((r_pad, OUT_W), jnp.bfloat16),
        compiler_params=pltpu.CompilerParams(
            dimension_semantics=("parallel",)),
    )(x,
      w6p.astype(jnp.bfloat16), b6p,
      w7p.astype(jnp.bfloat16), b7p,
      wp.astype(jnp.bfloat16), bp)

    # Tiny epilogue: slice the slab and widen to f32 for downstream consumers
    # (bf16 rounding of x/logits/box ~1e-2 rel tol vs f32 reference).
    out = out[:R].astype(jnp.float32)
    feat = out[:, :H_REP]
    class_logits = out[:, H_REP:H_REP + N_CLS]
    box_regression = out[:, H_REP + N_CLS:H_REP + N_CLS + BOX_D]
    return feat, class_logits, box_regression


# ------- ROIAlign via interpolation matmuls (gather-free, sampling_ratio=1) -------
def roi_align_single_image(feat_chw, boxes, out_size, spatial_scale):
    """feat_chw: (C, H, W); boxes: (n, 4) image coords (x1,y1,x2,y2).
    Bilinear sampling expressed as  Wy @ feat @ Wx^T  (two dense einsums, no
    XLA gather).  Legacy convention: aligned=False, width/height clamped >= 1.
    """
    C, H, W = feat_chw.shape
    x1 = boxes[:, 0] * spatial_scale
    y1 = boxes[:, 1] * spatial_scale
    x2 = boxes[:, 2] * spatial_scale
    y2 = boxes[:, 3] * spatial_scale
    bw = jnp.maximum(x2 - x1, 1.0)
    bh = jnp.maximum(y2 - y1, 1.0)

    steps = (jnp.arange(out_size, dtype=jnp.float32) + 0.5) / out_size   # (P,)
    xs = jnp.clip(x1[:, None] + steps[None, :] * bw[:, None], 0.0, W - 1.0)  # (n,P)
    ys = jnp.clip(y1[:, None] + steps[None, :] * bh[:, None], 0.0, H - 1.0)  # (n,P)

    # Dense bilinear weight matrices: wy[n,p,h] = max(0, 1-|ys[n,p]-h|)
    hg = jnp.arange(H, dtype=jnp.float32)
    wg = jnp.arange(W, dtype=jnp.float32)
    wy = jnp.maximum(0.0, 1.0 - jnp.abs(ys[:, :, None] - hg[None, None, :]))  # (n,P,H)
    wx = jnp.maximum(0.0, 1.0 - jnp.abs(xs[:, :, None] - wg[None, None, :]))  # (n,P,W)

    # pooled[n,c,p,q] = sum_{h,w} wy[n,p,h] * feat[c,h,w] * wx[n,q,w]
    tmp = jnp.einsum('nph,chw->ncpw', wy, feat_chw)
    pooled = jnp.einsum('ncpw,nqw->ncpq', tmp, wx)
    return pooled                                                         # (n,C,P,P)


def stereo_feature_pooling(left_feats, right_feats, proposals_per_image):
    """left/right_feats: (N, C, H, W); proposals: list of (n, 4) per image
    (equal n per image; pad proposal counts per image for production use)."""
    boxes = jnp.stack(proposals_per_image, axis=0)               # (N, n, 4)
    pool = jax.vmap(
        lambda f, b: roi_align_single_image(f, b, P_RES, SPATIAL_SCALE))
    p_l = pool(left_feats, boxes)                                # (N, n, C, P, P)
    p_r = pool(right_feats, boxes)
    pooled = jnp.concatenate([p_l, p_r], axis=2)                 # (N, n, 2C, P, P)
    # Cast fused into the pooling epilogue: the Pallas MLP consumes bf16.
    return pooled.reshape(-1, D_IN).astype(jnp.bfloat16)         # (R, 2C*P*P)


# ---------------- full forward (inference / eval path) ----------------
def stereo_plane_roi_box_head_forward(left_feats, right_feats, proposals, params):
    pooled_flat = stereo_feature_pooling(left_feats, right_feats, proposals)
    x, class_logits, box_regression = stereo_box_head_mlp(pooled_flat, params)
    flattened_x = x  # predictor flattens; x is already (R, H_REP)
    class_prob = jax.nn.softmax(class_logits, axis=-1)
    # TODO(synk): post_processor box decoding + per-class NMS (data-dependent
    # dynamic-shape filtering) has no clean Pallas equivalent; returning raw
    # softmax scores, box regression deltas and the input proposals instead.
    result = (class_prob, box_regression, proposals)
    losses = {}  # eval mode
    return x, result, losses, flattened_x, class_logits


# ---------------- deterministic parameter construction ----------------
def make_params(key):
    ks = jax.random.split(key, 8)
    w6 = 0.02 * jax.random.normal(ks[0], (D_IN, H_REP), jnp.float32)
    b6 = jnp.zeros((1, H_REP), jnp.float32)
    w7 = 0.02 * jax.random.normal(ks[1], (H_REP, H_REP), jnp.float32)
    b7 = jnp.zeros((1, H_REP), jnp.float32)
    wc = 0.01 * jax.random.normal(ks[2], (H_REP, N_CLS), jnp.float32)
    bc = jnp.zeros((1, N_CLS), jnp.float32)
    wb = 0.001 * jax.random.normal(ks[3], (H_REP, BOX_D), jnp.float32)
    bb = jnp.zeros((1, BOX_D), jnp.float32)
    return (w6, b6, w7, b7, wc, bc, wb, bb)


if __name__ == "__main__":
    key = jax.random.PRNGKey(0)
    k_feat_l, k_feat_r, k_box, k_param = jax.random.split(key, 4)

    # NCHW feature maps (as PyTorch), 2 images, single FPN level.
    left_feats = jax.random.normal(k_feat_l, (2, C_IN, 16, 16), jnp.float32)
    right_feats = jax.random.normal(k_feat_r, (2, C_IN, 16, 16), jnp.float32)

    # 8 deterministic proposals per image in image coords (image size ~64).
    n_prop = 8
    img_size = 16.0 / SPATIAL_SCALE
    raw = jax.random.uniform(k_box, (2, n_prop, 4), jnp.float32)
    x1 = raw[..., 0] * (img_size - 12.0)
    y1 = raw[..., 1] * (img_size - 12.0)
    x2 = x1 + 6.0 + raw[..., 2] * 6.0
    y2 = y1 + 6.0 + raw[..., 3] * 6.0
    boxes = jnp.stack([x1, y1, x2, y2], axis=-1)                 # (2, 8, 4)
    proposals = [boxes[0], boxes[1]]                             # R = 16 total

    params = make_params(k_param)

    fwd = jax.jit(stereo_plane_roi_box_head_forward)
    x, result, losses, flattened_x, class_logits = jax.block_until_ready(
        fwd(left_feats, right_feats, proposals, params)
    )

    R = 2 * n_prop
    assert x.shape == (R, H_REP)
    assert class_logits.shape == (R, N_CLS)
    assert result[0].shape == (R, N_CLS)
    assert result[1].shape == (R, BOX_D)
    assert flattened_x.shape == (R, H_REP)
    assert isinstance(losses, dict) and len(losses) == 0
    assert bool(jnp.all(jnp.isfinite(x)))
    assert bool(jnp.allclose(jnp.sum(result[0], axis=-1), 1.0, atol=1e-3))
    print("KERNEL_OK")
</pallas_src>

<mosaic_0001>
module attributes {stable_mosaic.version = 11 : i64} {
  func.func @_stereo_head_kernel(%arg0: i32, %arg1: memref<16x128xbf16, #tpu.memory_space<vmem>>, %arg2: memref<128x128xbf16, #tpu.memory_space<vmem>>, %arg3: memref<1x128xf32, #tpu.memory_space<vmem>>, %arg4: memref<128x128xbf16, #tpu.memory_space<vmem>>, %arg5: memref<1x128xf32, #tpu.memory_space<vmem>>, %arg6: memref<128x128xbf16, #tpu.memory_space<vmem>>, %arg7: memref<1x128xf32, #tpu.memory_space<vmem>>, %arg8: memref<16x128xbf16, #tpu.memory_space<vmem>>) attributes {dimension_semantics = [#tpu.dimension_semantics<parallel>], iteration_bounds = array<i64: 1>, scalar_prefetch = 0 : i64, scratch_operands = 0 : i64, tpu.core_type = #tpu.core_type<tc>, window_params = [{transform_indices = @transform_0, window_bounds = array<i64: 16, 128>}, {pipeline_mode = #tpu.pipeline_mode<synchronous>, transform_indices = @transform_1, window_bounds = array<i64: 128, 128>}, {pipeline_mode = #tpu.pipeline_mode<synchronous>, transform_indices = @transform_2, window_bounds = array<i64: 1, 128>}, {pipeline_mode = #tpu.pipeline_mode<synchronous>, transform_indices = @transform_3, window_bounds = array<i64: 128, 128>}, {pipeline_mode = #tpu.pipeline_mode<synchronous>, transform_indices = @transform_4, window_bounds = array<i64: 1, 128>}, {pipeline_mode = #tpu.pipeline_mode<synchronous>, transform_indices = @transform_5, window_bounds = array<i64: 128, 128>}, {pipeline_mode = #tpu.pipeline_mode<synchronous>, transform_indices = @transform_6, window_bounds = array<i64: 1, 128>}, {transform_indices = @transform_7, window_bounds = array<i64: 16, 128>}]} {
    %c0 = arith.constant 0 : index
    %c0_0 = arith.constant 0 : index
    %0 = vector.load %arg1[%c0, %c0_0] : memref<16x128xbf16, #tpu.memory_space<vmem>>, vector<16x128xbf16>
    %c0_1 = arith.constant 0 : index
    %c0_2 = arith.constant 0 : index
    %1 = vector.load %arg2[%c0_1, %c0_2] : memref<128x128xbf16, #tpu.memory_space<vmem>>, vector<128x128xbf16>
    %cst = arith.constant dense<0.000000e+00> : vector<16x128xf32>
    %2 = tpu.matmul %0, %1, %cst {dimension_numbers = #tpu.dot_dimension_numbers<[1], [0], [0], [1], [0, 0, 1, 1], [], []>} : vector<16x128xbf16>, vector<128x128xbf16>, vector<16x128xf32> -> vector<16x128xf32>
    %c0_3 = arith.constant 0 : index
    %c0_4 = arith.constant 0 : index
    %3 = vector.load %arg3[%c0_3, %c0_4] : memref<1x128xf32, #tpu.memory_space<vmem>>, vector<1x128xf32>
    %4 = vector.broadcast %3 : vector<1x128xf32> to vector<16x128xf32>
    %5 = arith.addf %2, %4 : vector<16x128xf32>
    %cst_5 = arith.constant 0.000000e+00 : f32
    %6 = vector.broadcast %cst_5 : f32 to vector<16x128xf32>
    %7 = arith.maximumf %5, %6 : vector<16x128xf32>
    %8 = arith.truncf %7 : vector<16x128xf32> to vector<16x128xbf16>
    %c0_6 = arith.constant 0 : index
    %c0_7 = arith.constant 0 : index
    %9 = vector.load %arg4[%c0_6, %c0_7] : memref<128x128xbf16, #tpu.memory_space<vmem>>, vector<128x128xbf16>
    %cst_8 = arith.constant dense<0.000000e+00> : vector<16x128xf32>
    %10 = tpu.matmul %8, %9, %cst_8 {dimension_numbers = #tpu.dot_dimension_numbers<[1], [0], [0], [1], [0, 0, 1, 1], [], []>} : vector<16x128xbf16>, vector<128x128xbf16>, vector<16x128xf32> -> vector<16x128xf32>
    %c0_9 = arith.constant 0 : index
    %c0_10 = arith.constant 0 : index
    %11 = vector.load %arg5[%c0_9, %c0_10] : memref<1x128xf32, #tpu.memory_space<vmem>>, vector<1x128xf32>
    %12 = vector.broadcast %11 : vector<1x128xf32> to vector<16x128xf32>
    %13 = arith.addf %10, %12 : vector<16x128xf32>
    %cst_11 = arith.constant 0.000000e+00 : f32
    %14 = vector.broadcast %cst_11 : f32 to vector<16x128xf32>
    %15 = arith.maximumf %13, %14 : vector<16x128xf32>
    %16 = arith.truncf %15 : vector<16x128xf32> to vector<16x128xbf16>
    %c0_12 = arith.constant 0 : index
    %c0_13 = arith.constant 0 : index
    %17 = vector.load %arg6[%c0_12, %c0_13] : memref<128x128xbf16, #tpu.memory_space<vmem>>, vector<128x128xbf16>
    %cst_14 = arith.constant dense<0.000000e+00> : vector<16x128xf32>
    %18 = tpu.matmul %16, %17, %cst_14 {dimension_numbers = #tpu.dot_dimension_numbers<[1], [0], [0], [1], [0, 0, 1, 1], [], []>} : vector<16x128xbf16>, vector<128x128xbf16>, vector<16x128xf32> -> vector<16x128xf32>
    %c0_15 = arith.constant 0 : index
    %c0_16 = arith.constant 0 : index
    %19 = vector.load %arg7[%c0_15, %c0_16] : memref<1x128xf32, #tpu.memory_space<vmem>>, vector<1x128xf32>
    %20 = vector.broadcast %19 : vector<1x128xf32> to vector<16x128xf32>
    %21 = arith.addf %18, %20 : vector<16x128xf32>
    %22 = arith.truncf %21 : vector<16x128xf32> to vector<16x128xbf16>
    %c0_17 = arith.constant 0 : index
    %c0_18 = arith.constant 0 : index
    %23 = vector.load %arg8[%c0_17, %c0_18] : memref<16x128xbf16, #tpu.memory_space<vmem>>, vector<16x128xbf16>
    tpu.vector_store %arg8[%c0_17, %c0_18], %22 {strides = array<i32>} : memref<16x128xbf16, #tpu.memory_space<vmem>>, vector<16x128xbf16>,
    return
  }
  func.func @transform_0(%arg0: i32) -> (i32, i32) {
    %c0_i32 = arith.constant 0 : i32
    %c0_i32_0 = arith.constant 0 : i32
    return %arg0, %c0_i32 : i32, i32
  }
  func.func @transform_1(%arg0: i32) -> (i32, i32) {
    %c0_i32 = arith.constant 0 : i32
    %c0_i32_0 = arith.constant 0 : i32
    %c0_i32_1 = arith.constant 0 : i32
    return %c0_i32, %c0_i32_0 : i32, i32
  }
  func.func @transform_2(%arg0: i32) -> (i32, i32) {
    %c0_i32 = arith.constant 0 : i32
    %c0_i32_0 = arith.constant 0 : i32
    %c0_i32_1 = arith.constant 0 : i32
    return %c0_i32, %c0_i32_0 : i32, i32
  }
  func.func @transform_3(%arg0: i32) -> (i32, i32) {
    %c0_i32 = arith.constant 0 : i32
    %c0_i32_0 = arith.constant 0 : i32
    %c0_i32_1 = arith.constant 0 : i32
    return %c0_i32, %c0_i32_0 : i32, i32
  }
  func.func @transform_4(%arg0: i32) -> (i32, i32) {
    %c0_i32 = arith.constant 0 : i32
    %c0_i32_0 = arith.constant 0 : i32
    %c0_i32_1 = arith.constant 0 : i32
    return %c0_i32, %c0_i32_0 : i32, i32
  }
  func.func @transform_5(%arg0: i32) -> (i32, i32) {
    %c0_i32 = arith.constant 0 : i32
    %c0_i32_0 = arith.constant 0 : i32
    %c0_i32_1 = arith.constant 0 : i32
    return %c0_i32, %c0_i32_0 : i32, i32
  }
  func.func @transform_6(%arg0: i32) -> (i32, i32) {
    %c0_i32 = arith.constant 0 : i32
    %c0_i32_0 = arith.constant 0 : i32
    %c0_i32_1 = arith.constant 0 : i32
    return %c0_i32, %c0_i32_0 : i32, i32
  }
  func.func @transform_7(%arg0: i32) -> (i32, i32) {
    %c0_i32 = arith.constant 0 : i32
    %c0_i32_0 = arith.constant 0 : i32
    return %arg0, %c0_i32 : i32, i32
  }
}

</mosaic_0001>

<bundles_post_ra>
// kernel: stereo_plane_roi_box_head_forward.1
= control target key start
LH: loop header
LB: loop body
LE: loop exit
PB: predicated region body
PF: predicated region fallthrough
CT: control target
= control target key end

     0   :  { %v542_v0 = vmov 0.0   ;;  %vm543_vm0 = vmmov 0   ;;  %s701_s1 = inlined_call_operand.vmem [shape: bf16[128,128], index: 1, kind: input, shape index: {}]   ;;  %s702_s3 = inlined_call_operand.vmem [shape: bf16[128,128], index: 3, kind: input, shape index: {}]   ;;  %s703_s0 = inlined_call_operand.vmem [shape: bf16[16,128], index: 0, kind: input, shape index: {}]   ;;  %s704_s5 = inlined_call_operand.vmem [shape: bf16[128,128], index: 5, kind: input, shape index: {}]   ;;  %s705_s2 = inlined_call_operand.vmem [shape: f32[1,128], index: 2, kind: input, shape index: {}]   ;;  %s706_s4 = inlined_call_operand.vmem [shape: f32[1,128], index: 4, kind: input, shape index: {}]   ;;  %s707_s6 = inlined_call_operand.vmem [shape: f32[1,128], index: 6, kind: input, shape index: {}]   ;;  %s708_s7 = inlined_call_operand.vmem [shape: bf16[16,128], index: 7, kind: output, shape index: {}]  }
   0x1   :  { %455 = vmatprep.subr.bf16.mxu0 %v542_v0  ;;  %v517_v1 = vld [vmem:[%s701_s1] sm:$0xff]   ;;  %471 = vmatprep.mubr.msk.bf16.mxu0 %vm543_vm0, %v542_v0  ;;  %v518_v2 = vld [vmem:[%s701_s1 + $0x8] sm:$0xff]   ;;  %v519_v3 = vld [vmem:[%s701_s1 + $0x10] sm:$0xff]  }
   0x2   :  { %475 = vmatprep.subr.bf16.mxu1 %v542_v0  ;;  %491 = vmatprep.mubr.msk.bf16.mxu1 %vm543_vm0, %v542_v0  ;;  %v526_v4 = vld [vmem:[%s702_s3] sm:$0xff]   ;;  %v520_v5 = vld [vmem:[%s701_s1 + $0x18] sm:$0xff]   ;;  %v527_v6 = vld [vmem:[%s702_s3 + $0x8] sm:$0xff]  }
   0x3   :  { %456 = vmatpush3.bf16.msra.mxu0 %v517_v1  ;;  %476 = vmatpush3.bf16.msra.mxu1 %v526_v4  ;;  %v521_v7 = vld [vmem:[%s701_s1 + $0x20] sm:$0xff]   ;;  %v528_v8 = vld [vmem:[%s702_s3 + $0x10] sm:$0xff]   ;;  %v522_v9 = vld [vmem:[%s701_s1 + $0x28] sm:$0xff]  }
   0x4   :  { %457 = vmatprep.subr.bf16.mxu0 %v542_v0  ;;  %477 = vmatprep.subr.bf16.mxu1 %v542_v0  ;;  %v529_v10 = vld [vmem:[%s702_s3 + $0x18] sm:$0xff]   ;;  %v523_v11 = vld [vmem:[%s701_s1 + $0x30] sm:$0xff]   ;;  %v530_v12 = vld [vmem:[%s702_s3 + $0x20] sm:$0xff]  }
   0x5   :  { %v524_v13 = vld [vmem:[%s701_s1 + $0x38] sm:$0xff]   ;;  %v531_v14 = vld [vmem:[%s702_s3 + $0x28] sm:$0xff]   ;;  %v525_v15 = vld [vmem:[%s703_s0] sm:$0xff]  }
   0x6   :  { %v532_v16 = vld [vmem:[%s702_s3 + $0x30] sm:$0xff]   ;;  %v533_v17 = vld [vmem:[%s702_s3 + $0x38] sm:$0xff]   ;;  %v534_v18 = vld [vmem:[%s704_s5] sm:$0xff]  }
   0x7   :  { %458 = vmatpush3.bf16.msra.mxu0 %v518_v2  ;;  %478 = vmatpush3.bf16.msra.mxu1 %v527_v6  ;;  %v535_v19 = vld [vmem:[%s704_s5 + $0x8] sm:$0xff]   ;;  %v536_v20 = vld [vmem:[%s704_s5 + $0x10] sm:$0xff]   ;;  %v537_v21 = vld [vmem:[%s704_s5 + $0x18] sm:$0xff]  }
   0x8   :  { %459 = vmatprep.subr.bf16.mxu0 %v542_v0  ;;  %479 = vmatprep.subr.bf16.mxu1 %v542_v0  ;;  %v538_v22 = vld [vmem:[%s704_s5 + $0x20] sm:$0xff]   ;;  %v539_v23 = vld [vmem:[%s704_s5 + $0x28] sm:$0xff]   ;;  %v540_v34 = vld [vmem:[%s704_s5 + $0x30] sm:$0xff]  }
   0x9   :  { %v391_v24 = vld [vmem:[%s705_s2] ss:$0 sm:$0xff]  ;;  %v541_v35 = vld [vmem:[%s704_s5 + $0x38] sm:$0xff]  }
   0xa   :  { %v401_v36 = vld [vmem:[%s706_s4] ss:$0 sm:$0xff] }
   0xb   :  { %460 = vmatpush3.bf16.msra.mxu0 %v519_v3  ;;  %480 = vmatpush3.bf16.msra.mxu1 %v528_v8  ;;  %v410_v46 = vld [vmem:[%s707_s6] ss:$0 sm:$0xff] }
   0xc   :  { %461 = vmatprep.subr.bf16.mxu0 %v542_v0  ;;  %481 = vmatprep.subr.bf16.mxu1 %v542_v0 }
   0xf   :  { %462 = vmatpush3.bf16.msra.mxu0 %v520_v5  ;;  %482 = vmatpush3.bf16.msra.mxu1 %v529_v10 }
  0x10   :  { %463 = vmatprep.subr.bf16.mxu0 %v542_v0  ;;  %483 = vmatprep.subr.bf16.mxu1 %v542_v0 }
  0x13   :  { %464 = vmatpush3.bf16.msra.mxu0 %v521_v7  ;;  %484 = vmatpush3.bf16.msra.mxu1 %v530_v12 }
  0x14   :  { %465 = vmatprep.subr.bf16.mxu0 %v542_v0  ;;  %485 = vmatprep.subr.bf16.mxu1 %v542_v0 }
  0x17   :  { %466 = vmatpush3.bf16.msra.mxu0 %v522_v9  ;;  %486 = vmatpush3.bf16.msra.mxu1 %v531_v14 }
  0x18   :  { %467 = vmatprep.subr.bf16.mxu0 %v542_v0  ;;  %487 = vmatprep.subr.bf16.mxu1 %v542_v0 }
  0x1b   :  { %468 = vmatpush3.bf16.msra.mxu0 %v523_v11  ;;  %488 = vmatpush3.bf16.msra.mxu1 %v532_v16 }
  0x1c   :  { %469 = vmatprep.subr.bf16.mxu0 %v542_v0  ;;  %489 = vmatprep.subr.bf16.mxu1 %v542_v0 }
  0x1f   :  { %470 = vmatpush3.bf16.msra.mxu0 %v524_v13  ;;  %490 = vmatpush3.bf16.msra.mxu1 %v533_v17 }
  0x20   :  { %495 = vmatprep.subr.bf16.mxu0 %v542_v0 }
  0x22   :  { %472 = vmatmul.mubr.bf16.vlgmr.msra.gmra.mrb[0].mxu0 %v525_v15 }
  0x23   :  { %511 = vmatprep.mubr.msk.bf16.mxu0 %vm543_vm0, %v542_v0  ;;  %496 = vmatpush3.bf16.msra.mxu0 %v534_v18 }
  0x24   :  { %497 = vmatprep.subr.bf16.mxu0 %v542_v0 }
  0x27   :  { %498 = vmatpush3.bf16.msra.mxu0 %v535_v19 }
  0x28   :  { %499 = vmatprep.subr.bf16.mxu0 %v542_v0 }
  0x2b   :  { %500 = vmatpush3.bf16.msra.mxu0 %v536_v20 }
  0x2c   :  { %501 = vmatprep.subr.bf16.mxu0 %v542_v0 }
  0x2f   :  { %502 = vmatpush3.bf16.msra.mxu0 %v537_v21 }
  0x30   :  { %503 = vmatprep.subr.bf16.mxu0 %v542_v0 }
  0x33   :  { %504 = vmatpush3.bf16.msra.mxu0 %v538_v22 }
  0x34   :  { %505 = vmatprep.subr.bf16.mxu0 %v542_v0 }
  0x37   :  { %506 = vmatpush3.bf16.msra.mxu0 %v539_v23 }
  0x38   :  { %507 = vmatprep.subr.bf16.mxu0 %v542_v0 }
  0x3b   :  { %508 = vmatpush3.bf16.msra.mxu0 %v540_v34 }
  0x3c   :  { %509 = vmatprep.subr.bf16.mxu0 %v542_v0 }
  0x3f   :  { %510 = vmatpush3.bf16.msra.mxu0 %v541_v35 }
  0xf5   :  { %v140_v25 = vpop.f32.mrb[0].mxu0 }
  0xf6   :  { %v141_v26 = vadd.f32 %v391_v24, %v140_v25  ;;  %v473_v27 = vpop.f32.mrb[1].mxu0 }
  0xf7   :  { %v143_v28 = vpop.f32.mrb[2].mxu0 }
  0xf8   :  { %v144_v29 = vadd.f32 %v391_v24, %v143_v28  ;;  %v474_v30 = vpop.f32.mrb[3].mxu0  ;;  %v147_v31 = vmax.f32 %v141_v26, 0.0 }
  0xfa   :  { %v148_v32 = vmax.f32 %v144_v29, 0.0 }
  0xfc   :  { %v149_v33 = vpack.c.bf16 %v148_v32, %v147_v31 }
  0xfe   :  { %492 = vmatmul.mubr.bf16.vlgmr.msra.gmra.mrb[0].mxu1 %v149_v33 }
 0x1d1   :  { %v255_v37 = vpop.f32.mrb[0].mxu1 }
 0x1d2   :  { %v256_v38 = vadd.f32 %v401_v36, %v255_v37  ;;  %v493_v39 = vpop.f32.mrb[1].mxu1 }
 0x1d3   :  { %v258_v40 = vpop.f32.mrb[2].mxu1 }
 0x1d4   :  { %v259_v41 = vadd.f32 %v401_v36, %v258_v40  ;;  %v494_v42 = vpop.f32.mrb[3].mxu1  ;;  %v262_v43 = vmax.f32 %v256_v38, 0.0 }
 0x1d6   :  { %v263_v44 = vmax.f32 %v259_v41, 0.0 }
 0x1d8   :  { %v264_v45 = vpack.c.bf16 %v263_v44, %v262_v43 }
 0x1da   :  { %512 = vmatmul.mubr.bf16.vlgmr.msra.gmra.mrb[4].mxu0 %v264_v45 }
 0x2ad   :  { %v370_v47 = vpop.f32.mrb[4].mxu0 }
 0x2ae   :  { %v513_v48 = vpop.f32.mrb[5].mxu0  ;;  %v371_v50 = vadd.f32 %v410_v46, %v370_v47 }
 0x2af   :  { %v373_v49 = vpop.f32.mrb[6].mxu0 }
 0x2b0   :  { %v374_v51 = vadd.f32 %v410_v46, %v373_v49  ;;  %v514_v52 = vpop.f32.mrb[7].mxu0 }
 0x2b2   :  { %v426_v53 = vpack.c.bf16 %v374_v51, %v371_v50 }
 0x2b4   :  { %427 = vst [vmem:[%s708_s7] sm:$0xff] %v426_v53  }

</bundles_post_ra>
